<compile_context>
chip_gen: v7x
topology: tpu7x:2x2x1
jax: 0.10.0
libtpu: 0.0.40
codegen_flags: <defaults>
</compile_context>

<pallas_src>
import jax
import jax.numpy as jnp
from jax.experimental import pallas as pl
from jax.experimental.pallas import tpu as pltpu


def _round_up(x, m):
    return ((x + m - 1) // m) * m


def _tensorcores_per_chip():
    """Best-effort detection of chips exposing >1 TensorCore per device."""
    try:
        kind = jax.devices()[0].device_kind.lower()
    except Exception:
        return 1
    if any(tag in kind for tag in ("v7", "7x", "v4", "v5p")):
        return 2
    return 1


def actor_ppo_kernel(state_ref, fc1_ref, head_ref, out_ref):
    # state_ref : (S, TB)     batch tile, batch on lanes
    # fc1_ref   : (Hp, S+2)   cols [0:S] = w1^T, col S = b1,
    #                         col S+1 rows {0,1} = {b_mu, b_sigma}
    # head_ref  : (Hp, 2)     col 0 = w_mu, col 1 = w_sigma
    # out_ref   : (2, TB)     row 0 = mu, row 1 = sigma (lane-dense slab)
    S = state_ref.shape[0]

    s = state_ref[...]                                  # (S, TB)
    f = fc1_ref[...]                                    # (Hp, S+2)
    h = head_ref[...]                                   # (Hp, 2)

    # --- fc1 on the VPU: contraction dim is only S (=3); an MXU pass would be
    #     >95% padding, so do S broadcast multiply-adds in exact f32.
    z = f[:, S:S + 1]                                   # (Hp, 1) bias column
    for k in range(S):                                  # static unroll (S tiny)
        z = z + f[:, k:k + 1] * s[k:k + 1, :]           # (Hp,1)*(1,TB)->(Hp,TB)
    x = jnp.tanh(z)                                     # (Hp, TB) activations

    # --- fused mu/sigma heads: 1-lane-wide outputs, so skip the MXU and use
    #     sublane reductions (VPU mul + XLU reduce), exact f32.
    b_mu = f[0:1, S + 1:S + 2]                          # (1, 1) scalar bias
    b_sg = f[1:2, S + 1:S + 2]                          # (1, 1) scalar bias
    mu_z = jnp.sum(x * h[:, 0:1], axis=0, keepdims=True) + b_mu   # (1, TB)
    sg_z = jnp.sum(x * h[:, 1:2], axis=0, keepdims=True) + b_sg   # (1, TB)

    out_ref[0:1, :] = 2.0 * jnp.tanh(mu_z)              # mu row
    out_ref[1:2, :] = jnp.logaddexp(sg_z, 0.0)          # sigma row (stable softplus)


def actor_ppo_forward(state, fc1_pack, head_pack, *, max_batch_tile=2048):
    """state: (B, state_dim) f32 -> (mu, sigma), each (B, 1) f32."""
    B, S = state.shape
    Hp = fc1_pack.shape[0]
    assert fc1_pack.shape == (Hp, S + 2)
    assert head_pack.shape == (Hp, 2)
    assert Hp % 8 == 0

    lane = 128
    B_lanes = _round_up(B, lane)

    # Balanced tile split: at most max_batch_tile lanes per tile, and on
    # multi-TC chips an even number of >= 2 tiles so both cores get work.
    n_tiles = pl.cdiv(B_lanes, max_batch_tile)
    n_cores = _tensorcores_per_chip()
    if n_cores > 1 and B_lanes >= n_cores * lane:
        n_tiles = max(n_tiles, n_cores)
        if n_tiles % n_cores:
            n_tiles += n_cores - (n_tiles % n_cores)
    TB = _round_up(pl.cdiv(B_lanes, n_tiles), lane)     # multiple of 128
    n_blk = pl.cdiv(B, TB)

    # Batch on the lane axis. No padded copy: Pallas clips the ragged last
    # block (garbage input lanes are inert, OOB output lanes are dropped).
    # TODO(synk): accept a pre-transposed (S, B) state upstream to drop this
    # tiny transpose as well.
    state_t = state.T                                   # (S, B)

    out = pl.pallas_call(
        actor_ppo_kernel,
        out_shape=jax.ShapeDtypeStruct((2, B), jnp.float32),
        grid_spec=pltpu.PrefetchScalarGridSpec(
            num_scalar_prefetch=0,
            grid=(n_blk,),
            in_specs=[
                pl.BlockSpec((S, TB), lambda i: (0, i)),       # pipelined batch tiles
                pl.BlockSpec((Hp, S + 2), lambda i: (0, 0)),   # weights, VMEM-resident
                pl.BlockSpec((Hp, 2), lambda i: (0, 0)),       # fused heads, resident
            ],
            out_specs=pl.BlockSpec((2, TB), lambda i: (0, i)),  # fused (mu|sigma) slab
        ),
        compiler_params=pltpu.CompilerParams(
            dimension_semantics=("parallel",),   # shard batch tiles over TCs (v7x)
            vmem_limit_bytes=32 << 20,           # ample for TB<=4096, safe on v7x
        ),
    )(state_t, fc1_pack, head_pack)

    mu = out[0].reshape(B, 1)
    sigma = out[1].reshape(B, 1)
    return mu, sigma


def init_params(key, state_dim, hidden_dim):
    # Deterministic init mimicking nn.Linear's U(-1/sqrt(fan_in), 1/sqrt(fan_in)).
    ks = jax.random.split(key, 6)

    def lin(kw, kb, fan_in, fan_out):
        bound = 1.0 / jnp.sqrt(jnp.float32(fan_in))
        w = jax.random.uniform(kw, (fan_in, fan_out), jnp.float32, -bound, bound)
        b = jax.random.uniform(kb, (fan_out,), jnp.float32, -bound, bound)
        return w, b

    w1, b1 = lin(ks[0], ks[1], state_dim, hidden_dim)
    w_mu, b_mu = lin(ks[2], ks[3], hidden_dim, 1)
    w_sig, b_sig = lin(ks[4], ks[5], hidden_dim, 1)
    return w1, b1, w_mu, b_mu, w_sig, b_sig


def pack_params(w1, b1, w_mu, b_mu, w_sig, b_sig):
    """Pack the 6 Linear params into 2 kernel operands; pad hidden to mult-of-8."""
    S, H = w1.shape
    Hp = _round_up(H, 8)   # 100 -> 104; padded rows are zero -> tanh(0)=0 and the
                           # zero head weights ignore them -> numerically identical.
    fc1_pack = jnp.zeros((Hp, S + 2), jnp.float32)
    fc1_pack = fc1_pack.at[:H, :S].set(w1.T)
    fc1_pack = fc1_pack.at[:H, S].set(b1)
    fc1_pack = fc1_pack.at[0, S + 1].set(b_mu[0])      # head biases stashed in the
    fc1_pack = fc1_pack.at[1, S + 1].set(b_sig[0])     # spare lane column (free)

    head_pack = jnp.zeros((Hp, 2), jnp.float32)
    head_pack = head_pack.at[:H, 0].set(w_mu[:, 0])
    head_pack = head_pack.at[:H, 1].set(w_sig[:, 0])
    return fc1_pack, head_pack


def reference_forward(state, w1, b1, w_mu, b_mu, w_sig, b_sig):
    hi = jax.lax.Precision.HIGHEST  # kernel math is exact f32; match precision here
    x = jnp.tanh(jnp.dot(state, w1, precision=hi) + b1)
    mu = 2.0 * jnp.tanh(jnp.dot(x, w_mu, precision=hi) + b_mu)
    sigma = jax.nn.softplus(jnp.dot(x, w_sig, precision=hi) + b_sig)
    return mu, sigma


if __name__ == "__main__":
    batch = 8
    state_dim = 3          # e.g. Pendulum observation space
    hidden_dim = 100       # as in the PyTorch module

    key = jax.random.PRNGKey(0)
    k_state, k_params = jax.random.split(key)

    state = jax.random.normal(k_state, (batch, state_dim), jnp.float32)
    raw_params = init_params(k_params, state_dim, hidden_dim)
    fc1_pack, head_pack = pack_params(*raw_params)

    mu, sigma = actor_ppo_forward(state, fc1_pack, head_pack)
    jax.block_until_ready((mu, sigma))

    mu_ref, sigma_ref = reference_forward(state, *raw_params)
    assert mu.shape == (batch, 1) and sigma.shape == (batch, 1)
    assert jnp.allclose(mu, mu_ref, atol=1e-4, rtol=1e-4), \
        float(jnp.max(jnp.abs(mu - mu_ref)))
    assert jnp.allclose(sigma, sigma_ref, atol=1e-4, rtol=1e-4), \
        float(jnp.max(jnp.abs(sigma - sigma_ref)))

    print("KERNEL_OK")
</pallas_src>

<mosaic_0001>
module attributes {stable_mosaic.version = 11 : i64} {
  func.func @actor_ppo_kernel(%arg0: i32, %arg1: memref<3x128xf32, #tpu.memory_space<vmem>>, %arg2: memref<104x5xf32, #tpu.memory_space<vmem>>, %arg3: memref<104x2xf32, #tpu.memory_space<vmem>>, %arg4: memref<2x128xf32, #tpu.memory_space<vmem>>) attributes {dimension_semantics = [#tpu.dimension_semantics<parallel>], iteration_bounds = array<i64: 1>, scalar_prefetch = 0 : i64, scratch_operands = 0 : i64, tpu.core_type = #tpu.core_type<tc>, window_params = [{transform_indices = @transform_0, window_bounds = array<i64: 3, 128>}, {pipeline_mode = #tpu.pipeline_mode<synchronous>, transform_indices = @transform_1, window_bounds = array<i64: 104, 5>}, {pipeline_mode = #tpu.pipeline_mode<synchronous>, transform_indices = @transform_2, window_bounds = array<i64: 104, 2>}, {transform_indices = @transform_3, window_bounds = array<i64: 2, 128>}]} {
    %c0 = arith.constant 0 : index
    %c0_0 = arith.constant 0 : index
    %0 = vector.load %arg1[%c0, %c0_0] : memref<3x128xf32, #tpu.memory_space<vmem>>, vector<3x128xf32>
    %c0_1 = arith.constant 0 : index
    %c0_2 = arith.constant 0 : index
    %1 = vector.load %arg2[%c0_1, %c0_2] : memref<104x5xf32, #tpu.memory_space<vmem>>, vector<104x5xf32>
    %c0_3 = arith.constant 0 : index
    %c0_4 = arith.constant 0 : index
    %2 = vector.load %arg3[%c0_3, %c0_4] : memref<104x2xf32, #tpu.memory_space<vmem>>, vector<104x2xf32>
    %3 = vector.extract_strided_slice %1 {offsets = [0, 3], sizes = [104, 1], strides = [1, 1]} : vector<104x5xf32> to vector<104x1xf32>
    %4 = vector.extract_strided_slice %1 {offsets = [0, 0], sizes = [104, 1], strides = [1, 1]} : vector<104x5xf32> to vector<104x1xf32>
    %5 = vector.extract_strided_slice %0 {offsets = [0, 0], sizes = [1, 128], strides = [1, 1]} : vector<3x128xf32> to vector<1x128xf32>
    %6 = vector.broadcast %4 : vector<104x1xf32> to vector<104x128xf32>
    %7 = vector.broadcast %5 : vector<1x128xf32> to vector<104x128xf32>
    %8 = arith.mulf %6, %7 : vector<104x128xf32>
    %9 = vector.broadcast %3 : vector<104x1xf32> to vector<104x128xf32>
    %10 = arith.addf %9, %8 : vector<104x128xf32>
    %11 = vector.extract_strided_slice %1 {offsets = [0, 1], sizes = [104, 1], strides = [1, 1]} : vector<104x5xf32> to vector<104x1xf32>
    %12 = vector.extract_strided_slice %0 {offsets = [1, 0], sizes = [1, 128], strides = [1, 1]} : vector<3x128xf32> to vector<1x128xf32>
    %13 = vector.broadcast %11 : vector<104x1xf32> to vector<104x128xf32>
    %14 = vector.broadcast %12 : vector<1x128xf32> to vector<104x128xf32>
    %15 = arith.mulf %13, %14 : vector<104x128xf32>
    %16 = arith.addf %10, %15 : vector<104x128xf32>
    %17 = vector.extract_strided_slice %1 {offsets = [0, 2], sizes = [104, 1], strides = [1, 1]} : vector<104x5xf32> to vector<104x1xf32>
    %18 = vector.extract_strided_slice %0 {offsets = [2, 0], sizes = [1, 128], strides = [1, 1]} : vector<3x128xf32> to vector<1x128xf32>
    %19 = vector.broadcast %17 : vector<104x1xf32> to vector<104x128xf32>
    %20 = vector.broadcast %18 : vector<1x128xf32> to vector<104x128xf32>
    %21 = arith.mulf %19, %20 : vector<104x128xf32>
    %22 = arith.addf %16, %21 : vector<104x128xf32>
    %23 = math.tanh %22 : vector<104x128xf32>
    %24 = vector.extract_strided_slice %1 {offsets = [0, 4], sizes = [1, 1], strides = [1, 1]} : vector<104x5xf32> to vector<1x1xf32>
    %25 = vector.extract_strided_slice %1 {offsets = [1, 4], sizes = [1, 1], strides = [1, 1]} : vector<104x5xf32> to vector<1x1xf32>
    %26 = vector.extract_strided_slice %2 {offsets = [0, 0], sizes = [104, 1], strides = [1, 1]} : vector<104x2xf32> to vector<104x1xf32>
    %27 = vector.broadcast %26 : vector<104x1xf32> to vector<104x128xf32>
    %28 = arith.mulf %23, %27 : vector<104x128xf32>
    %cst = arith.constant dense<0.000000e+00> : vector<128xf32>
    %29 = vector.multi_reduction <add>, %28, %cst [0] : vector<104x128xf32> to vector<128xf32>
    %30 = vector.shape_cast %29 : vector<128xf32> to vector<1x128xf32>
    %31 = vector.broadcast %24 : vector<1x1xf32> to vector<1x128xf32>
    %32 = arith.addf %30, %31 : vector<1x128xf32>
    %33 = vector.extract_strided_slice %2 {offsets = [0, 1], sizes = [104, 1], strides = [1, 1]} : vector<104x2xf32> to vector<104x1xf32>
    %34 = vector.broadcast %33 : vector<104x1xf32> to vector<104x128xf32>
    %35 = arith.mulf %23, %34 : vector<104x128xf32>
    %cst_5 = arith.constant dense<0.000000e+00> : vector<128xf32>
    %36 = vector.multi_reduction <add>, %35, %cst_5 [0] : vector<104x128xf32> to vector<128xf32>
    %37 = vector.shape_cast %36 : vector<128xf32> to vector<1x128xf32>
    %38 = vector.broadcast %25 : vector<1x1xf32> to vector<1x128xf32>
    %39 = arith.addf %37, %38 : vector<1x128xf32>
    %40 = math.tanh %32 : vector<1x128xf32>
    %cst_6 = arith.constant 2.000000e+00 : f32
    %41 = vector.broadcast %cst_6 : f32 to vector<1x128xf32>
    %42 = arith.mulf %41, %40 : vector<1x128xf32>
    %c0_7 = arith.constant 0 : index
    %c0_8 = arith.constant 0 : index
    %43 = vector.load %arg4[%c0_7, %c0_8] : memref<2x128xf32, #tpu.memory_space<vmem>>, vector<1x128xf32>
    tpu.vector_store %arg4[%c0_7, %c0_8], %42 {strides = array<i32>} : memref<2x128xf32, #tpu.memory_space<vmem>>, vector<1x128xf32>,
    %cst_9 = arith.constant 0.000000e+00 : f32
    %44 = vector.broadcast %cst_9 : f32 to vector<1x128xf32>
    %45 = arith.maximumf %39, %44 : vector<1x128xf32>
    %46 = vector.broadcast %cst_9 : f32 to vector<1x128xf32>
    %47 = arith.subf %39, %46 : vector<1x128xf32>
    %48 = arith.cmpf one, %47, %47 : vector<1x128xf32>
    %49 = vector.broadcast %cst_9 : f32 to vector<1x128xf32>
    %50 = arith.addf %39, %49 : vector<1x128xf32>
    %51 = math.absf %47 : vector<1x128xf32>
    %cst_10 = arith.constant 0.000000e+00 : f32
    %52 = vector.broadcast %cst_10 : f32 to vector<1x128xf32>
    %53 = arith.subf %52, %51 : vector<1x128xf32>
    %54 = math.exp %53 : vector<1x128xf32>
    %55 = math.log1p %54 : vector<1x128xf32>
    %56 = arith.addf %45, %55 : vector<1x128xf32>
    %57 = arith.select %48, %50, %56 : vector<1x128xi1>, vector<1x128xf32>
    %c1 = arith.constant 1 : index
    %c0_11 = arith.constant 0 : index
    %58 = vector.load %arg4[%c1, %c0_11] : memref<2x128xf32, #tpu.memory_space<vmem>>, vector<1x128xf32>
    tpu.vector_store %arg4[%c1, %c0_11], %57 {strides = array<i32>} : memref<2x128xf32, #tpu.memory_space<vmem>>, vector<1x128xf32>,
    return
  }
  func.func @transform_0(%arg0: i32) -> (i32, i32) {
    %c0_i32 = arith.constant 0 : i32
    %c0_i32_0 = arith.constant 0 : i32
    return %c0_i32, %arg0 : i32, i32
  }
  func.func @transform_1(%arg0: i32) -> (i32, i32) {
    %c0_i32 = arith.constant 0 : i32
    %c0_i32_0 = arith.constant 0 : i32
    %c0_i32_1 = arith.constant 0 : i32
    return %c0_i32, %c0_i32_0 : i32, i32
  }
  func.func @transform_2(%arg0: i32) -> (i32, i32) {
    %c0_i32 = arith.constant 0 : i32
    %c0_i32_0 = arith.constant 0 : i32
    %c0_i32_1 = arith.constant 0 : i32
    return %c0_i32, %c0_i32_0 : i32, i32
  }
  func.func @transform_3(%arg0: i32) -> (i32, i32) {
    %c0_i32 = arith.constant 0 : i32
    %c0_i32_0 = arith.constant 0 : i32
    return %c0_i32, %arg0 : i32, i32
  }
}

</mosaic_0001>

<bundles_post_ra>
// kernel: tpu_custom_call.1
= control target key start
LH: loop header
LB: loop body
LE: loop exit
PB: predicated region body
PF: predicated region fallthrough
CT: control target
= control target key end

     0   :  { %v667_v2 = vmov 0   ;;  %s986_s0 = inlined_call_operand.vmem [shape: f32[3,8], index: 0, kind: input, shape index: {}]   ;;  %s987_s1 = inlined_call_operand.vmem [shape: f32[104,5], index: 1, kind: input, shape index: {}]   ;;  %s988_s2 = inlined_call_operand.vmem [shape: f32[104,2], index: 2, kind: input, shape index: {}]   ;;  %s989_s3 = inlined_call_operand.hbm [shape: f32[2,8], index: 3, kind: output, shape index: {}]  }
   0x1   :  { %v696_v0 = vld [vmem:[%s987_s1 + $0x10] sm:$0xff]  ;;  %v701_v1 = vld [vmem:[%s987_s1] sm:$0xff]  ;;  %594 = vset.pattern.permute.xlu1 %v667_v2  ;;  %593 = vset.pattern.permute.xlu0 %v667_v2  ;;  %v19_v3 = vld [vmem:[%s987_s1 + $0x18] sm:$0xff] }
   0x2   :  { %54 = vperm.xlu1 %594, %v696_v0   ;;  %44 = vperm.xlu0 %593, %v701_v1   ;;  %v17_v4 = vld [vmem:[%s987_s1 + $0x8] sm:$0xff]  ;;  %v20_v6 = vld [vmem:[%s987_s1 + $0x20] sm:$0xff] }
   0x3   :  { %v21_v5 = vld [vmem:[%s987_s1 + $0x28] sm:$0xff] }
   0x6   :  { %59 = vperm.xlu1 %594, %v19_v3   ;;  %49 = vperm.xlu0 %593, %v17_v4  }
   0x7   :  { %8 = vsyncpa [#allocation3], 0  ;;  %v23_v7 = vld [vmem:[%s987_s1 + $0x38] sm:$0xff]  ;;  %v22_v8 = vld [vmem:[%s987_s1 + $0x30] sm:$0xff]  ;;  %v668_v14 = vmov 3   ;;  %v669_v15 = vmov 1   ;;  %v107_v32 = vlaneseq }
   0x8   :  { %v728_v9 = vld [vmem:[%s987_s1 + $0x48] sm:$0xff]  ;;  %v24_v10 = vld [vmem:[%s987_s1 + $0x40] sm:$0xff]  ;;  %v737_v11 = vld [vmem:[%s987_s1 + $0x58] sm:$0xff]  ;;  %v670_v16 = vmov 2  }
   0x9   :  { %v26_v12 = vld [vmem:[%s987_s1 + $0x50] sm:$0xff]  ;;  %v746_v13 = vld [vmem:[%s987_s1 + $0x60] sm:$0xff]  ;;  %v30_v17 = vld [vmem:[%s988_s2 + $0x8] sm:$0xff]  ;;  %v816_v36 = vshrl.u32 %v107_v32, 7 }
   0xa   :  { %69 = vperm.xlu1 %594, %v21_v5   ;;  %64 = vperm.xlu0 %593, %v20_v6   ;;  %v33_v18 = vld [vmem:[%s988_s2 + $0x20] sm:$0xff]  ;;  %v35_v20 = vld [vmem:[%s988_s2 + $0x30] sm:$0xff]  ;;  %v32_v24 = vld [vmem:[%s988_s2 + $0x18] sm:$0xff] }
   0xb   :  { %v29_v19 = vld [vmem:[%s988_s2] sm:$0xff]  ;;  %v31_v22 = vld [vmem:[%s988_s2 + $0x10] sm:$0xff]  ;;  %v34_v28 = vld [vmem:[%s988_s2 + $0x28] sm:$0xff]  ;;  %v109_v40 = vsub.s32 0, %v816_v36 }
   0xc   :  { %v37_v21 = vld [vmem:[%s988_s2 + $0x40] sm:$0xff]  ;;  %v786_v23 = vld [vmem:[%s988_s2 + $0x50] sm:$0xff]  ;;  %v36_v31 = vld [vmem:[%s988_s2 + $0x38] sm:$0xff] }
   0xd   :  { %v796_v25 = vld [vmem:[%s988_s2 + $0x60] sm:$0xff]  ;;  %v38_v35 = vld [vmem:[%s988_s2 + $0x48] sm:$0xff]  ;;  %v40_v39 = vld [vmem:[%s988_s2 + $0x58] sm:$0xff] }
   0xe   :  { %79 = vperm.xlu1 %594, %v23_v7   ;;  %74 = vperm.xlu0 %593, %v22_v8   ;;  %v829_v43 = vld [vmem:[%s986_s0] sm:$0x7]  ;;  %s672_s0 = smov [#allocation2]  }
   0xf   :  { %v832_v44 = vrot.slane %v829_v43, %v109_v40  ;;  %s579_s2 = sshll.u32 %s672_s0, 4  ;;  %s580_s2 = int_to_ptr.vmem [resolvable:$true] %s579_s2 }
  0x10   :  { %s643_s1 = scalar_lea.vmem %s580_s2, 32  ;;  %p648_p1 = scmp.lt.s32.totalorder %s580_s2, %s580_s2 }
  0x11   :  { %p644_p0 = scmp.ne.s32.totalorder %s580_s2, %s643_s1  ;;  %p649_p2 = scmp.lt.s32.totalorder %s643_s1, %s643_s1 }
  0x12   :  { %89 = vperm.xlu1 %594, %v728_v9   ;;  %84 = vperm.xlu0 %593, %v24_v10  }
  0x13   :  { %p650_p3 = por %p649_p2, %p648_p1 }
  0x15   :  { %p651_p4 = pnand %p650_p3, %p644_p0 }
  0x16   :  { %99 = vperm.xlu1 %594, %v737_v11   ;;  %94 = vperm.xlu0 %593, %v26_v12  }
  0x1a   :  { %595 = vset.pattern.permute.xlu1 %v668_v14  ;;  %104 = vperm.xlu0 %593, %v746_v13  }
  0x1b   :  { %125 = vperm.xlu1 %595, %v701_v1  }
  0x1e   :  { %596 = vset.pattern.permute.xlu0 %v668_v14 }
  0x1f   :  { %133 = vperm.xlu1 %595, %v696_v0   ;;  %129 = vperm.xlu0 %596, %v17_v4  }
  0x23   :  { %137 = vperm.xlu1 %595, %v19_v3   ;;  %141 = vperm.xlu0 %596, %v20_v6  }
  0x27   :  { %145 = vperm.xlu1 %595, %v21_v5   ;;  %149 = vperm.xlu0 %596, %v22_v8  }
  0x2b   :  { %153 = vperm.xlu1 %595, %v23_v7   ;;  %157 = vperm.xlu0 %596, %v24_v10  }
  0x2f   :  { %161 = vperm.xlu1 %595, %v728_v9   ;;  %165 = vperm.xlu0 %596, %v26_v12  }
  0x33   :  { %169 = vperm.xlu1 %595, %v737_v11   ;;  %173 = vperm.xlu0 %596, %v746_v13  }
  0x37   :  { %597 = vset.pattern.permute.xlu1 %v669_v15  ;;  %599 = vset.pattern.permute.xlu0 %v670_v16 }
  0x38   :  { %190 = vperm.xlu1 %597, %v701_v1   ;;  %276 = vperm.xlu0 %599, %v17_v4  }
  0x3c   :  { %198 = vperm.xlu1 %597, %v696_v0   ;;  %288 = vperm.xlu0 %599, %v20_v6  }
  0x40   :  { %202 = vperm.xlu1 %597, %v19_v3   ;;  %296 = vperm.xlu0 %599, %v22_v8  }
  0x44   :  { %210 = vperm.xlu1 %597, %v21_v5   ;;  %304 = vperm.xlu0 %599, %v24_v10  }
  0x48   :  { %218 = vperm.xlu1 %597, %v23_v7   ;;  %312 = vperm.xlu0 %599, %v26_v12  }
  0x4c   :  { %226 = vperm.xlu1 %597, %v728_v9   ;;  %603 = vset.pattern.permute.xlu0 %v669_v15 }
  0x4d   :  { %194 = vperm.xlu0 %603, %v17_v4  }
  0x50   :  { %234 = vperm.xlu1 %597, %v737_v11  }
  0x51   :  { %206 = vperm.xlu0 %603, %v20_v6  }
  0x54   :  { %598 = vset.pattern.permute.xlu1 %v670_v16 }
  0x55   :  { %272 = vperm.xlu1 %598, %v701_v1   ;;  %214 = vperm.xlu0 %603, %v22_v8  }
  0x59   :  { %280 = vperm.xlu1 %598, %v696_v0   ;;  %222 = vperm.xlu0 %603, %v24_v10  }
  0x5d   :  { %284 = vperm.xlu1 %598, %v19_v3   ;;  %230 = vperm.xlu0 %603, %v26_v12  }
  0x61   :  { %292 = vperm.xlu1 %598, %v21_v5   ;;  %238 = vperm.xlu0 %603, %v746_v13   ;;  %v671_v5 = vmov 4  }
  0x65   :  { %300 = vperm.xlu1 %598, %v23_v7   ;;  %472 = vperm.xlu0 %603, %v30_v17  }
  0x69   :  { %600 = vset.pattern.permute.xlu1 %v669_v15  ;;  %484 = vperm.xlu0 %603, %v33_v18  }
  0x6a   :  { %468 = vperm.xlu1 %600, %v29_v19  }
  0x6d   :  { %492 = vperm.xlu0 %603, %v35_v20  }
  0x6e   :  { %601 = vset.pattern.permute.xlu1 %v670_v16 }
  0x6f   :  { %308 = vperm.xlu1 %601, %v728_v9  }
  0x71   :  { %500 = vperm.xlu0 %603, %v37_v21  }
  0x73   :  { %602 = vset.pattern.permute.xlu1 %v669_v15 }
  0x74   :  { %476 = vperm.xlu1 %602, %v31_v22  }
  0x75   :  { %508 = vperm.xlu0 %603, %v786_v23  }
  0x78   :  { %480 = vperm.xlu1 %602, %v32_v24  }
  0x79   :  { %516 = vperm.xlu0 %603, %v796_v25  }
  0x7c   :  { %604 = vset.pattern.permute.xlu1 %v670_v16 }
  0x7d   :  { %316 = vperm.xlu1 %604, %v737_v11   ;;  %607 = vset.pattern.permute.xlu0 %v667_v2 }
  0x7e   :  { %373 = vperm.xlu0 %607, %v30_v17  }
  0x81   :  { %v55_v26 = vpop.permute.xlu1 %54  ;;  %320 = vperm.xlu1 %604, %v746_v13   ;;  %v45_v27 = vpop.permute.xlu0 %44 }
  0x82   :  { %388 = vperm.xlu0 %607, %v33_v18   ;;  %v111_v47 = vmul.f32 %v832_v44, %v45_v27  ;;  %v113_v51 = vmul.f32 %v832_v44, %v55_v26 }
  0x85   :  { %v60_v29 = vpop.permute.xlu1 %59  ;;  %605 = vset.pattern.permute.xlu1 %v669_v15  ;;  %v806_v30 = vpop.permute.xlu0 %49 }
  0x86   :  { %488 = vperm.xlu1 %605, %v34_v28   ;;  %398 = vperm.xlu0 %607, %v35_v20   ;;  %v114_v55 = vmul.f32 %v832_v44, %v60_v29  ;;  %v112_v27 = vmul.f32 %v832_v44, %v806_v30 }
  0x89   :  { %v70_v33 = vpop.permute.xlu1 %69  ;;  %v811_v34 = vpop.permute.xlu0 %64 }
  0x8a   :  { %496 = vperm.xlu1 %605, %v36_v31   ;;  %408 = vperm.xlu0 %607, %v37_v21   ;;  %v116_v59 = vmul.f32 %v832_v44, %v70_v33 }
  0x8d   :  { %v80_v37 = vpop.permute.xlu1 %79  ;;  %v818_v38 = vpop.permute.xlu0 %74 }
  0x8e   :  { %504 = vperm.xlu1 %605, %v38_v35   ;;  %413 = vperm.xlu0 %607, %v38_v35   ;;  %v118_v63 = vmul.f32 %v832_v44, %v80_v37 }
  0x91   :  { %v90_v41 = vpop.permute.xlu1 %89  ;;  %v824_v42 = vpop.permute.xlu0 %84 }
  0x92   :  { %512 = vperm.xlu1 %605, %v40_v39   ;;  %423 = vperm.xlu0 %607, %v40_v39   ;;  %v120_v6 = vmul.f32 %v832_v44, %v90_v41 }
  0x95   :  { %v100_v45 = vpop.permute.xlu1 %99  ;;  %v834_v46 = vpop.permute.xlu0 %94 }
  0x96   :  { %606 = vset.pattern.permute.xlu1 %v667_v2  ;;  %610 = vset.pattern.permute.xlu0 %v669_v15  ;;  %v122_v10 = vmul.f32 %v832_v44, %v100_v45 }
  0x97   :  { %368 = vperm.xlu1 %606, %v29_v19  }
  0x99   :  { %v839_v48 = vpop.permute.xlu0 %104 }
  0x9a   :  { %v126_v49 = vpop.permute.xlu1 %125 }
  0x9b   :  { %v841_v50 = vadd.f32 %v126_v49, %v111_v47  ;;  %378 = vperm.xlu1 %606, %v31_v22  }
  0x9e   :  { %v134_v52 = vpop.permute.xlu1 %133  ;;  %v130_v53 = vpop.permute.xlu0 %129 }
  0x9f   :  { %v844_v54 = vadd.f32 %v134_v52, %v113_v51  ;;  %383 = vperm.xlu1 %606, %v32_v24   ;;  %v177_v33 = vadd.f32 %v130_v53, %v112_v27 }
  0xa2   :  { %v138_v56 = vpop.permute.xlu1 %137  ;;  %v847_v57 = vpop.permute.xlu0 %141 }
  0xa3   :  { %v849_v58 = vadd.f32 %v138_v56, %v114_v55  ;;  %393 = vperm.xlu1 %606, %v34_v28   ;;  %v115_v56 = vmul.f32 %v832_v44, %v811_v34 }
  0xa6   :  { %v146_v60 = vpop.permute.xlu1 %145  ;;  %v852_v61 = vpop.permute.xlu0 %149 }
  0xa7   :  { %v854_v62 = vadd.f32 %v146_v60, %v116_v59  ;;  %403 = vperm.xlu1 %606, %v36_v31  }
  0xaa   :  { %v154_v0 = vpop.permute.xlu1 %153  ;;  %v857_v3 = vpop.permute.xlu0 %157 }
  0xab   :  { %v859_v4 = vadd.f32 %v154_v0, %v118_v63  ;;  %608 = vset.pattern.permute.xlu1 %v671_v5 }
  0xac   :  { %463 = vperm.xlu1 %608, %v701_v1  }
  0xae   :  { %v162_v7 = vpop.permute.xlu1 %161  ;;  %v863_v8 = vpop.permute.xlu0 %165 }
  0xaf   :  { %v865_v9 = vadd.f32 %v162_v7, %v120_v6  ;;  %v180_v6 = vadd.f32 %v847_v57, %v115_v56 }
  0xb0   :  { %609 = vset.pattern.permute.xlu1 %v667_v2 }
  0xb1   :  { %418 = vperm.xlu1 %609, %v786_v23   ;;  %v243_v23 = vsub.s32 1, %v816_v36 }
  0xb2   :  { %v170_v11 = vpop.permute.xlu1 %169  ;;  %v872_v13 = vpop.permute.xlu0 %173 }
  0xb3   :  { %v870_v12 = vadd.f32 %v170_v11, %v122_v10  ;;  %v892_v28 = vrot.slane %v829_v43, %v243_v23 }
  0xb5   :  { %428 = vperm.xlu1 %609, %v796_v25   ;;  %v325_v25 = vsub.s32 2, %v816_v36 }
  0xb7   :  { %v191_v1 = vpop.permute.xlu1 %190  ;;  %v277_v14 = vpop.permute.xlu0 %276  ;;  %v895_v31 = vrot.slane %v829_v43, %v325_v25 }
  0xb8   :  { %v245_v39 = vmul.f32 %v892_v28, %v191_v1 }
  0xb9   :  { %v328_v36 = vmul.f32 %v895_v31, %v277_v14 }
  0xba   :  { %v258_v47 = vadd.f32 %v245_v39, %v841_v50 }
  0xbb   :  { %v199_v15 = vpop.permute.xlu1 %198  ;;  %v289_v16 = vpop.permute.xlu0 %288 }
  0xbc   :  { %v247_v53 = vmul.f32 %v892_v28, %v199_v15  ;;  %v331_v11 = vmul.f32 %v895_v31, %v289_v16 }
  0xbe   :  { %v260_v63 = vadd.f32 %v247_v53, %v844_v54 }
  0xbf   :  { %v203_v17 = vpop.permute.xlu1 %202  ;;  %v875_v18 = vpop.permute.xlu0 %296 }
  0xc0   :  { %v248_v50 = vmul.f32 %v892_v28, %v203_v17 }
  0xc2   :  { %v261_v34 = vadd.f32 %v248_v50, %v849_v58  ;;  %v117_v58 = vmul.f32 %v832_v44, %v818_v38 }
  0xc3   :  { %v211_v19 = vpop.permute.xlu1 %210  ;;  %v877_v2 = vpop.permute.xlu0 %304 }
  0xc4   :  { %v250_v16 = vmul.f32 %v892_v28, %v211_v19  ;;  %v182_v39 = vadd.f32 %v852_v61, %v117_v58 }
  0xc6   :  { %v263_v19 = vadd.f32 %v250_v16, %v854_v62 }
  0xc7   :  { %v879_v20 = vpop.permute.xlu1 %218  ;;  %v881_v21 = vpop.permute.xlu0 %312 }
  0xcb   :  { %v883_v22 = vpop.permute.xlu1 %226 }
  0xcc   :  { %v195_v24 = vpop.permute.xlu0 %194  ;;  %v254_v62 = vmul.f32 %v892_v28, %v883_v22 }
  0xcd   :  { %v246_v32 = vmul.f32 %v892_v28, %v195_v24 }
  0xcf   :  { %v887_v26 = vpop.permute.xlu1 %234  ;;  %v259_v40 = vadd.f32 %v246_v32, %v177_v33 }
  0xd0   :  { %v207_v29 = vpop.permute.xlu0 %206 }
  0xd1   :  { %v341_v49 = vadd.f32 %v328_v36, %v259_v40  ;;  %v249_v0 = vmul.f32 %v892_v28, %v207_v29 }
  0xd3   :  { %611 = vtanh.f32 %v341_v49  ;;  %v262_v1 = vadd.f32 %v249_v0, %v180_v6 }
  0xd4   :  { %v273_v35 = vpop.permute.xlu1 %272  ;;  %v215_v37 = vpop.permute.xlu0 %214 }
  0xd5   :  { %v327_v41 = vmul.f32 %v895_v31, %v273_v35  ;;  %v344_v25 = vadd.f32 %v331_v11, %v262_v1  ;;  %v251_v32 = vmul.f32 %v892_v28, %v215_v37  ;;  %v252_v37 = vmul.f32 %v892_v28, %v879_v20 }
  0xd7   :  { %v340_v51 = vadd.f32 %v327_v41, %v258_v47  ;;  %v119_v41 = vmul.f32 %v832_v44, %v824_v42  ;;  %v264_v47 = vadd.f32 %v251_v32, %v182_v39 }
  0xd8   :  { %v281_v30 = vpop.permute.xlu1 %280  ;;  %v223_v45 = vpop.permute.xlu0 %222 }
  0xd9   :  { %613 = vtanh.f32 %v340_v51  ;;  %v329_v59 = vmul.f32 %v895_v31, %v281_v30  ;;  %v333_v30 = vmul.f32 %v895_v31, %v875_v18  ;;  %v253_v49 = vmul.f32 %v892_v28, %v223_v45 }
  0xda   :  { %v121_v18 = vmul.f32 %v832_v44, %v834_v46  ;;  %v265_v45 = vadd.f32 %v252_v37, %v859_v4  ;;  %v335_v46 = vmul.f32 %v895_v31, %v877_v2  ;;  %v267_v4 = vadd.f32 %v254_v62, %v865_v9 }
  0xdb   :  { %v342_v7 = vadd.f32 %v329_v59, %v260_v63  ;;  %v346_v63 = vadd.f32 %v333_v30, %v264_v47 }
  0xdc   :  { %v285_v43 = vpop.permute.xlu1 %284  ;;  %v231_v52 = vpop.permute.xlu0 %230  ;;  %v186_v0 = vadd.f32 %v863_v8, %v121_v18 }
  0xdd   :  { %v330_v10 = vmul.f32 %v895_v31, %v285_v43  ;;  %v915_v15 = vpop.eup %611  ;;  %615 = vtanh.f32 %v342_v7  ;;  %v184_v43 = vadd.f32 %v857_v3, %v119_v41  ;;  %v255_v3 = vmul.f32 %v892_v28, %v231_v52 }
  0xde   :  { %v256_v52 = vmul.f32 %v892_v28, %v887_v26 }
  0xdf   :  { %v343_v54 = vadd.f32 %v330_v10, %v261_v34  ;;  %v266_v50 = vadd.f32 %v253_v49, %v184_v43  ;;  %v123_v10 = vmul.f32 %v832_v44, %v839_v48  ;;  %v268_v1 = vadd.f32 %v255_v3, %v186_v0 }
  0xe0   :  { %v293_v55 = vpop.permute.xlu1 %292  ;;  %v906_v60 = vpop.permute.xlu0 %238  ;;  %v337_v44 = vmul.f32 %v895_v31, %v881_v21  ;;  %v269_v9 = vadd.f32 %v256_v52, %v870_v12 }
  0xe1   :  { %617 = vtanh.f32 %v343_v54  ;;  %v332_v36 = vmul.f32 %v895_v31, %v293_v55  ;;  %v348_v34 = vadd.f32 %v335_v46, %v266_v50  ;;  %v257_v2 = vmul.f32 %v892_v28, %v906_v60 }
  0xe2   :  { %619 = vtanh.f32 %v344_v25 }
  0xe3   :  { %v917_v23 = vpop.eup %613  ;;  %v345_v53 = vadd.f32 %v332_v36, %v263_v19 }
  0xe4   :  { %v301_v5 = vpop.permute.xlu1 %300  ;;  %v473_v14 = vpop.permute.xlu0 %472 }
  0xe5   :  { %v520_v24 = vmul.f32 %v915_v15, %v473_v14  ;;  %v334_v42 = vmul.f32 %v895_v31, %v301_v5  ;;  %621 = vtanh.f32 %v345_v53 }
  0xe6   :  { %623 = vtanh.f32 %v346_v63 }
  0xe7   :  { %v925_v35 = vpop.eup %615  ;;  %v347_v22 = vadd.f32 %v334_v42, %v265_v45 }
  0xe8   :  { %v485_v33 = vpop.permute.xlu0 %484 }
  0xe9   :  { %v469_v17 = vpop.permute.xlu1 %468  ;;  %625 = vtanh.f32 %v347_v22 }
  0xea   :  { %v519_v57 = vmul.f32 %v917_v23, %v469_v17  ;;  %v188_v17 = vadd.f32 %v872_v13, %v123_v10  ;;  %627 = vtanh.f32 %v348_v34 }
  0xeb   :  { %v938_v51 = vpop.eup %617 }
  0xec   :  { %v532_v27 = vadd.f32 %v520_v24, %v519_v57  ;;  %v493_v56 = vpop.permute.xlu0 %492  ;;  %v947_v59 = vpop.eup %619  ;;  %v350_v24 = vadd.f32 %v337_v44, %v268_v1  ;;  %v270_v57 = vadd.f32 %v257_v2, %v188_v17 }
  0xed   :  { %v523_v5 = vmul.f32 %v947_v59, %v485_v33 }
  0xee   :  { %v309_v29 = vpop.permute.xlu1 %308 }
  0xef   :  { %v336_v7 = vmul.f32 %v895_v31, %v309_v29  ;;  %v622_v29 = vpop.eup %621 }
  0xf0   :  { %v501_v14 = vpop.permute.xlu0 %500  ;;  %v624_v21 = vpop.eup %623 }
  0xf1   :  { %v349_v48 = vadd.f32 %v336_v7, %v267_v4  ;;  %v525_v16 = vmul.f32 %v624_v21, %v493_v56 }
  0xf3   :  { %v477_v40 = vpop.permute.xlu1 %476  ;;  %629 = vtanh.f32 %v349_v48  ;;  %v626_v12 = vpop.eup %625 }
  0xf4   :  { %v521_v38 = vmul.f32 %v925_v35, %v477_v40  ;;  %v509_v60 = vpop.permute.xlu0 %508  ;;  %631 = vtanh.f32 %v350_v24  ;;  %v628_v41 = vpop.eup %627 }
  0xf6   :  { %v533_v61 = vadd.f32 %v532_v27, %v521_v38 }
  0xf7   :  { %v481_v55 = vpop.permute.xlu1 %480 }
  0xf8   :  { %v522_v20 = vmul.f32 %v938_v51, %v481_v55  ;;  %v517_v39 = vpop.permute.xlu0 %516 }
  0xfa   :  { %v534_v6 = vadd.f32 %v533_v61, %v522_v20 }
  0xfc   :  { %v317_v11 = vpop.permute.xlu1 %316  ;;  %v535_v8 = vadd.f32 %v534_v6, %v523_v5 }
  0xfd   :  { %v338_v54 = vmul.f32 %v895_v31, %v317_v11  ;;  %v630_v38 = vpop.eup %629  ;;  %v374_v53 = vpop.permute.xlu0 %373 }
  0xfe   :  { %v632_v49 = vpop.eup %631  ;;  %v432_v0 = vmul.f32 %v915_v15, %v374_v53 }
  0xff   :  { %v351_v27 = vadd.f32 %v338_v54, %v269_v9  ;;  %v529_v43 = vmul.f32 %v632_v49, %v509_v60 }
 0x100   :  { %v321_v26 = vpop.permute.xlu1 %320 }
 0x101   :  { %v339_v25 = vmul.f32 %v895_v31, %v321_v26  ;;  %633 = vtanh.f32 %v351_v27  ;;  %v527_v31 = vmul.f32 %v628_v41, %v501_v14  ;;  %v389_v63 = vpop.permute.xlu0 %388 }
 0x102   :  { %v435_v1 = vmul.f32 %v947_v59, %v389_v63 }
 0x103   :  { %v352_v28 = vadd.f32 %v339_v25, %v270_v57 }
 0x105   :  { %v489_v13 = vpop.permute.xlu1 %488  ;;  %635 = vtanh.f32 %v352_v28  ;;  %v399_v4 = vpop.permute.xlu0 %398 }
 0x106   :  { %v524_v58 = vmul.f32 %v622_v29, %v489_v13  ;;  %v437_v44 = vmul.f32 %v624_v21, %v399_v4 }
 0x108   :  { %v536_v32 = vadd.f32 %v535_v8, %v524_v58 }
 0x109   :  { %v497_v33 = vpop.permute.xlu1 %496  ;;  %v409_v14 = vpop.permute.xlu0 %408 }
 0x10a   :  { %v526_v36 = vmul.f32 %v626_v12, %v497_v33  ;;  %v537_v40 = vadd.f32 %v536_v32, %v525_v16  ;;  %v439_v25 = vmul.f32 %v628_v41, %v409_v14 }
 0x10b   :  { %v634_v61 = vpop.eup %633 }
 0x10c   :  { %v538_v30 = vadd.f32 %v537_v40, %v526_v36 }
 0x10d   :  { %v505_v19 = vpop.permute.xlu1 %504  ;;  %v414_v57 = vpop.permute.xlu0 %413 }
 0x10e   :  { %v528_v37 = vmul.f32 %v630_v38, %v505_v19  ;;  %v539_v47 = vadd.f32 %v538_v30, %v527_v31  ;;  %v440_v60 = vmul.f32 %v630_v38, %v414_v57 }
 0x10f   :  { %v636_v55 = vpop.eup %635 }
 0x110   :  { %v540_v42 = vadd.f32 %v539_v47, %v528_v37  ;;  %v531_v20 = vmul.f32 %v636_v55, %v517_v39 }
 0x111   :  { %v513_v18 = vpop.permute.xlu1 %512  ;;  %v424_v32 = vpop.permute.xlu0 %423 }
 0x112   :  { %v530_v62 = vmul.f32 %v634_v61, %v513_v18  ;;  %v541_v56 = vadd.f32 %v540_v42, %v529_v43  ;;  %v442_v36 = vmul.f32 %v634_v61, %v424_v32 }
 0x114   :  { %v542_v45 = vadd.f32 %v541_v56, %v530_v62 }
 0x116   :  { %v543_v50 = vadd.f32 %v542_v45, %v531_v20  ;;  %v369_v3 = vpop.permute.xlu1 %368 }
 0x117   :  { %v431_v5 = vmul.f32 %v917_v23, %v369_v3 }
 0x118   :  { %v544_v6 = vrot.slane %v543_v50, 4 }
 0x119   :  { %v444_v46 = vadd.f32 %v432_v0, %v431_v5 }
 0x11a   :  { %v545_v22 = vadd.f32 %v544_v6, %v543_v50  ;;  %v379_v7 = vpop.permute.xlu1 %378 }
 0x11b   :  { %v433_v10 = vmul.f32 %v925_v35, %v379_v7 }
 0x11c   :  { %v546_v8 = vrot.slane %v545_v22, 2 }
 0x11d   :  { %v445_v52 = vadd.f32 %v444_v46, %v433_v10 }
 0x11e   :  { %v384_v11 = vpop.permute.xlu1 %383  ;;  %v547_v15 = vadd.f32 %v546_v8, %v545_v22 }
 0x11f   :  { %v434_v34 = vmul.f32 %v938_v51, %v384_v11 }
 0x120   :  { %v548_v26 = vrot.slane %v547_v15, 1 }
 0x121   :  { %v446_v2 = vadd.f32 %v445_v52, %v434_v34 }
 0x122   :  { %v394_v54 = vpop.permute.xlu1 %393  ;;  %v549_v28 = vadd.f32 %v548_v26, %v547_v15 }
 0x123   :  { %v436_v17 = vmul.f32 %v622_v29, %v394_v54  ;;  %v447_v23 = vadd.f32 %v446_v2, %v435_v1 }
 0x125   :  { %v448_v48 = vadd.f32 %v447_v23, %v436_v17 }
 0x126   :  { %v404_v9 = vpop.permute.xlu1 %403 }
 0x127   :  { %v438_v24 = vmul.f32 %v626_v12, %v404_v9  ;;  %v449_v35 = vadd.f32 %v448_v48, %v437_v44 }
 0x129   :  { %v450_v27 = vadd.f32 %v449_v35, %v438_v24 }
 0x12b   :  { %v451_v51 = vadd.f32 %v450_v27, %v439_v25  ;;  %v464_v13 = vpop.permute.xlu1 %463 }
 0x12c   :  { %v550_v59 = vadd.f32 %v549_v28, %v464_v13 }
 0x12d   :  { %v452_v58 = vadd.f32 %v451_v51, %v440_v60 }
 0x12e   :  { %v557_v16 = vand.u32 2147483647, %v550_v59  ;;  %vm555_vm1 = vcmp.ne.f32.partialorder %v550_v59, %v550_v59 }
 0x130   :  { %v558_v33 = vsub.f32 0.0, %v557_v16  ;;  %v419_v29 = vpop.permute.xlu1 %418 }
 0x131   :  { %v441_v39 = vmul.f32 %v632_v49, %v419_v29 }
 0x132   :  { %v559_v21 = vmul.f32 1.442695, %v558_v33 }
 0x133   :  { %v453_v40 = vadd.f32 %v452_v58, %v441_v39 }
 0x134   :  { %637 = vpow2.f32 %v559_v21  ;;  %v429_v12 = vpop.permute.xlu1 %428 }
 0x135   :  { %v443_v31 = vmul.f32 %v636_v55, %v429_v12  ;;  %v454_v30 = vadd.f32 %v453_v40, %v442_v36  ;;  %v554_v55 = vmax.f32 %v550_v59, 0.0 }
 0x137   :  { %v455_v41 = vadd.f32 %v454_v30, %v443_v31 }
 0x139   :  { %v456_v19 = vrot.slane %v455_v41, 4 }
 0x13b   :  { %v457_v37 = vadd.f32 %v456_v19, %v455_v41 }
 0x13d   :  { %v458_v38 = vrot.slane %v457_v37, 2 }
 0x13e   :  { %v638_v47 = vpop.eup %637 }
 0x13f   :  { %v459_v43 = vadd.f32 %v458_v38, %v457_v37  ;;  %v561_v53 = vadd.f32 1.0, %v638_v47  ;;  %v564_v62 = vmul.f32 -0.5, %v638_v47  ;;  %v567_v61 = vand.u32 2147483647, %v638_v47 }
 0x141   :  { %v460_v42 = vrot.slane %v459_v43, 1  ;;  %639 = vlog2.f32 %v561_v53  ;;  %v565_v49 = vadd.f32 1.0, %v564_v62  ;;  %vm568_vm0 = vcmp.lt.f32.partialorder %v567_v61, 0.0004427343 }
 0x143   :  { %v461_v18 = vadd.f32 %v460_v42, %v459_v43  ;;  %v566_v63 = vmul.f32 %v638_v47, %v565_v49 }
 0x145   :  { %v466_v56 = vadd.f32 %v464_v13, %v461_v18 }
 0x147   :  { %641 = vtanh.f32 %v466_v56 }
 0x14b   :  { %v640_v20 = vpop.eup %639 }
 0x14c   :  { %v563_v45 = vmul.f32 0.6931472, %v640_v20 }
 0x14e   :  { %v569_v50 = vsel %vm568_vm0, %v566_v63, %v563_v45 }
 0x14f   :  { %v570_v3 = vadd.f32 %v569_v50, %v554_v55 }
 0x151   :  { %v642_v0 = vpop.eup %641  ;;  %v571_v5 = vsel %vm555_vm1, %v550_v59, %v570_v3 }
 0x152   :  { %v552_v6 = vmul.f32 2.0, %v642_v0  ;;  %572 = vst [vmem:[#allocation2] sm:$0x2] %v571_v5 }
 0x154   :  { %553 = vst [vmem:[#allocation2] sm:$0x1] %v552_v6 }
 0x155   :  { %654 = shalt.err (!%p651_p4)
}
 0x156   :  { %s655_s13 = scalar_lea.hbm %s989_s3, 32 }
 0x157   :  { %p656_p5 = scmp.ne.s32.totalorder %s989_s3, %s655_s13  ;;  %p659_p6 = scmp.lt.u32.totalorder %s655_s13, %s989_s3 }
 0x159   :  { %p661_p7 = pnand %p659_p6, %p656_p5 }
 0x15b   :  { %664 = shalt.err (!%p661_p7)
}
 0x15c   :  { %582 = dma.vmem_to_hbm [thread:$0]  %s580_s2, 32, %s989_s3, [#allocation3]  }
 0x15d   :  { %665 = dma.done.wait [#allocation3], 32  }
 0x15e   :  { %666 = vsyncadd [#allocation3], 4294967264 }
 0x15f   :  { %586 = vsyncpa [#allocation3], 1 }

</bundles_post_ra>
